<compile_context>
chip_gen: v6e
topology: v6e:2x2x1
jax: 0.10.0
libtpu: 0.0.40
codegen_flags: <defaults>
</compile_context>

<pallas_src>
import jax
import jax.numpy as jnp
from jax.experimental import pallas as pl
from jax.experimental.pallas import tpu as pltpu


# ~2 MiB per tile: with double-buffered input + output (4x tile bytes
# resident) this stays well under the default scoped-VMEM limit on every
# generation (16 MiB v5e, 32 MiB v6e, 32-of-64 MiB v7x), while large enough
# to amortize the ~0.35 us/step grid overhead and sit near the HBM roofline.
_TILE_BYTES = 2 * 1024 * 1024


def _identity_kernel(x_ref, o_ref):
    # Abstract BaseVAE.forward defines no transformation: identity copy.
    o_ref[...] = x_ref[...]


def _choose_lane_layout(total: int):
    """Flatten to (rows, lane) with a lane-dense (multiple-of-128) last dim."""
    for lane in (1024, 512, 256, 128):
        if total % lane == 0:
            return total // lane, lane
    # Tiny / oddly-sized tensors: single row, full-extent last dim (block
    # shape == full array dims, so the (8,128) divisibility rule is waived).
    return 1, total


def _sublane_multiple(dtype) -> int:
    # f32 -> 8, bf16 -> 16, int8/fp8 -> 32 (sub-32-bit packing along sublanes).
    return max(8, 32 // jnp.dtype(dtype).itemsize)


@jax.jit
def _pallas_identity(x: jnp.ndarray) -> jnp.ndarray:
    """Identity forward via a tiled, lane-dense Pallas copy kernel."""
    orig_shape = x.shape
    total = int(x.size)
    if total == 0:  # static under jit
        return x

    rows, lane = _choose_lane_layout(total)
    x2 = x.reshape(rows, lane)

    itemsize = jnp.dtype(x.dtype).itemsize
    tile_rows = max(1, _TILE_BYTES // (lane * itemsize))
    if tile_rows >= rows:
        tile_rows = rows  # single block along the row axis (== full dim)
    else:
        sub = _sublane_multiple(x.dtype)
        tile_rows = max(sub, (tile_rows // sub) * sub)
        tile_rows = min(tile_rows, rows)

    grid = (pl.cdiv(rows, tile_rows),)

    y2 = pl.pallas_call(
        _identity_kernel,
        out_shape=jax.ShapeDtypeStruct((rows, lane), x.dtype),
        grid=grid,
        in_specs=[pl.BlockSpec((tile_rows, lane), lambda i: (i, 0))],
        out_specs=pl.BlockSpec((tile_rows, lane), lambda i: (i, 0)),
        # Alias output onto the input buffer: with a donated / fused producer
        # the identity forward costs ~0 bytes of HBM traffic; otherwise XLA
        # inserts a defensive copy and correctness is unaffected.
        input_output_aliases={0: 0},
        compiler_params=pltpu.CompilerParams(
            dimension_semantics=("parallel",),
        ),
    )(x2)

    return y2.reshape(orig_shape)


class BaseVAE:
    """JAX/Pallas mirror of rlasim.lib.networks.BaseVAE.

    No parameters are created in __init__ (matches the PyTorch module).
    """

    def __init__(self, **kwargs) -> None:
        # nn.Module.__init__(**kwargs) registers no tensors -> nothing to init.
        pass

    def encode(self, input):
        raise NotImplementedError  # abstract in the reference module

    def decode(self, input):
        raise NotImplementedError  # abstract in the reference module

    def sample(self, batch_size: int, current_device: int, **kwargs):
        raise NotImplementedError  # abstract in the reference module

    def generate(self, x, **kwargs):
        raise NotImplementedError  # abstract in the reference module

    def forward(self, *inputs):
        # TODO(synk): BaseVAE.forward is an @abstractmethod (`pass`) with no
        # defined computation; subclasses supply the real encode/decode path.
        # The faithful kernelized behaviour is a pass-through of the first
        # input via a lane-dense, tiled, output-aliased Pallas copy kernel.
        return _pallas_identity(inputs[0])

    def loss_function(self, *inputs, **kwargs):
        raise NotImplementedError  # abstract in the reference module

    def __call__(self, *inputs):
        return self.forward(*inputs)


if __name__ == "__main__":
    key = jax.random.PRNGKey(0)
    # Small NCHW input consistent with a VAE-style image module.
    x = jax.random.normal(key, (2, 4, 16, 16), dtype=jnp.float32)
    expected = x.copy()  # keep a reference copy (output may alias the input)

    model = BaseVAE()
    out = model(x)
    out = jax.block_until_ready(out)

    assert out.shape == expected.shape and out.dtype == expected.dtype
    assert bool(jnp.allclose(out, expected))

    # Also exercise the multi-tile path (grid > 1, partial final block).
    x_big = jax.random.normal(key, (18, 4, 128, 128), dtype=jnp.float32)
    expected_big = x_big.copy()
    out_big = jax.block_until_ready(model(x_big))
    assert out_big.shape == expected_big.shape
    assert bool(jnp.allclose(out_big, expected_big))

    print("KERNEL_OK")
</pallas_src>

<mosaic_0001>
module attributes {stable_mosaic.version = 11 : i64} {
  func.func @_identity_kernel(%arg0: i32, %arg1: memref<2x1024xf32, #tpu.memory_space<vmem>>, %arg2: memref<2x1024xf32, #tpu.memory_space<vmem>>) attributes {dimension_semantics = [#tpu.dimension_semantics<parallel>], iteration_bounds = array<i64: 1>, scalar_prefetch = 0 : i64, scratch_operands = 0 : i64, tpu.core_type = #tpu.core_type<tc>, window_params = [{transform_indices = @transform_0, window_bounds = array<i64: 2, 1024>}, {transform_indices = @transform_1, window_bounds = array<i64: 2, 1024>}]} {
    %c0 = arith.constant 0 : index
    %c0_0 = arith.constant 0 : index
    %0 = vector.load %arg1[%c0, %c0_0] : memref<2x1024xf32, #tpu.memory_space<vmem>>, vector<2x1024xf32>
    %c0_1 = arith.constant 0 : index
    %c0_2 = arith.constant 0 : index
    %1 = vector.load %arg2[%c0_1, %c0_2] : memref<2x1024xf32, #tpu.memory_space<vmem>>, vector<2x1024xf32>
    tpu.vector_store %arg2[%c0_1, %c0_2], %0 {strides = array<i32>} : memref<2x1024xf32, #tpu.memory_space<vmem>>, vector<2x1024xf32>,
    return
  }
  func.func @transform_0(%arg0: i32) -> (i32, i32) {
    %c0_i32 = arith.constant 0 : i32
    %c0_i32_0 = arith.constant 0 : i32
    return %arg0, %c0_i32 : i32, i32
  }
  func.func @transform_1(%arg0: i32) -> (i32, i32) {
    %c0_i32 = arith.constant 0 : i32
    %c0_i32_0 = arith.constant 0 : i32
    return %arg0, %c0_i32 : i32, i32
  }
}

</mosaic_0001>

<bundles_post_ra>
// kernel: _pallas_identity.1
= control target key start
LH: loop header
LB: loop body
LE: loop exit
PB: predicated region body
PF: predicated region fallthrough
CT: control target
= control target key end

     0   :  { %s38_s0 = inlined_call_operand.vmem [shape: f32[2,1024], index: 0, kind: input, shape index: {}, may-alias: {0,1}]   ;;  %s39_s1 = inlined_call_operand.vmem [shape: f32[2,1024], index: 1, kind: output, shape index: {}, may-alias: {0,1}]  }
   0x1   :  { %v8_v0 = vld [vmem:[%s38_s0] sm:$0xff]  ;;  %v9_v1 = vld [vmem:[%s38_s0 + $0x8] sm:$0xff] }
   0x2   :  { %10 = vst [vmem:[%s39_s1] sm:$0xff] %v8_v0  ;;  %11 = vst [vmem:[%s39_s1 + $0x8] sm:$0xff] %v9_v1 }

</bundles_post_ra>
